<compile_context>
chip_gen: v7x
topology: tpu7x:2x2x1
jax: 0.10.0
libtpu: 0.0.40
codegen_flags: <defaults>
</compile_context>

<pallas_src>
import jax
import jax.numpy as jnp
from jax import lax
from jax.experimental import pallas as pl
from jax.experimental.pallas import tpu as pltpu

_SUBLANE = 8        # f32 sublane granularity
_MAX_TILE_N = 1024  # batch tile (measured ~86% HBM roofline at 1024-wide tiles)
_OUT_PAD = 16       # output lane padding (small: avoid 128-lane write blowup)


def _round_up(x, m):
    return ((x + m - 1) // m) * m


def _cdiv(a, b):
    return (a + b - 1) // b


def _single_cnn_kernel(x_ref, wb_ref, cb_ref, w1_ref, b1_ref, w2_ref, b2_ref,
                       o_ref):
    # x_ref : (tile_n, C_in*L)        flattened input tile (torch row-major)
    # wb_ref: (C_in*L, C_out*L_out)   banded conv matrix (Conv1d + Flatten fused)
    # cb_ref: (1, C_out*L_out)        conv bias in flatten order (f32)
    # w1_ref: (C_out*L_out, H)        Linear1 weight, transposed
    # b1_ref: (1, H)                  f32
    # w2_ref: (H, O_pad)              Linear2 weight, transposed + zero-padded
    # b2_ref: (1, O_pad)              f32
    # o_ref : (tile_n, O_pad)
    #
    # Conv1d (valid, stride 1) + ReLU, result already in torch Flatten order;
    # no in-kernel reshapes, three small GEMMs, f32 accumulation throughout.
    conv = jnp.dot(x_ref[...], wb_ref[...], preferred_element_type=jnp.float32)
    conv = jnp.maximum(conv + cb_ref[...], 0.0)          # (tile_n, C_out*L_out)

    h = jnp.dot(conv.astype(w1_ref.dtype), w1_ref[...],
                preferred_element_type=jnp.float32)
    h = jnp.maximum(h + b1_ref[...], 0.0)                # (tile_n, H)

    y = jnp.dot(h.astype(w2_ref.dtype), w2_ref[...],
                preferred_element_type=jnp.float32) + b2_ref[...]
    o_ref[...] = y.astype(o_ref.dtype)                   # (tile_n, O_pad)


def _choose_tiling(n):
    """Balanced batch tiling: tile_n multiple of 8, waste bounded, and >=2 grid
    steps whenever the batch is big enough to split (keeps both v7x TCs busy)."""
    n_tiles = max(1, _cdiv(n, _MAX_TILE_N))
    if n_tiles == 1 and n >= 2 * _SUBLANE:
        n_tiles = 2
    tile_n = _round_up(_cdiv(n, n_tiles), _SUBLANE)
    return tile_n, n_tiles * tile_n


def single_cnn_layer_forward(x_ncl, conv_w, conv_b, w1, b1, w2, b2,
                             *, compute_dtype=jnp.float32):
    """x_ncl: (N, C_in, L) like PyTorch; conv_w: (C_out, C_in, K);
    w1: (H, C_out*L_out); w2: (O, H).

    compute_dtype=jnp.bfloat16 halves x/weight HBM read traffic (v6e/v7x
    bf16-native); accumulation stays f32 via preferred_element_type.
    """
    N, C_in, L = x_ncl.shape
    C_out, _, K = conv_w.shape
    L_out = L - K + 1
    H = w1.shape[0]
    O = w2.shape[0]
    assert w1.shape[1] == C_out * L_out, "w1 shape inconsistent with conv"

    O_pad = _round_up(O, _OUT_PAD)
    tile_n, N_pad = _choose_tiling(N)

    # ---- Glue: layout plumbing only (all per-sample FLOPs live in the kernel)
    # x (N, C_in, L) flattened row-major -> column index c*L + m; no transpose,
    # no im2col duplication.
    x_flat = jnp.pad(x_ncl.reshape(N, C_in * L),
                     ((0, N_pad - N), (0, 0))).astype(compute_dtype)

    # Banded conv matrix:
    #   W_band[c*L + m, co*L_out + l] = conv_w[co, c, m-l] if 0 <= m-l < K else 0
    # so x_flat @ W_band == Flatten(ReLU-less Conv1d(x)) in torch order.
    # Built once at trace time; only valid while C_in*L and C_out*L_out are small.
    shifts = jnp.stack([jnp.eye(L, L_out, k=-k, dtype=conv_w.dtype)
                        for k in range(K)], axis=0)              # (K, L, L_out)
    w_band = jnp.einsum('ock,kml->cmol', conv_w, shifts)         # (C_in,L,C_out,L_out)
    w_band = w_band.reshape(C_in * L, C_out * L_out).astype(compute_dtype)
    # conv bias broadcast to flatten order co*L_out + l.
    cb_flat = jnp.repeat(conv_b, L_out).reshape(1, C_out * L_out).astype(jnp.float32)

    w1t = jnp.transpose(w1).astype(compute_dtype)                # (C_out*L_out, H)
    b1r = b1.reshape(1, H).astype(jnp.float32)
    w2t = jnp.pad(jnp.transpose(w2),
                  ((0, 0), (0, O_pad - O))).astype(compute_dtype)  # (H, O_pad)
    b2r = jnp.pad(b2.reshape(1, O), ((0, 0), (0, O_pad - O))).astype(jnp.float32)

    grid = (N_pad // tile_n,)
    out = pl.pallas_call(
        _single_cnn_kernel,
        out_shape=jax.ShapeDtypeStruct((N_pad, O_pad), jnp.float32),
        grid=grid,
        in_specs=[
            pl.BlockSpec((tile_n, C_in * L), lambda i: (i, 0)),
            pl.BlockSpec((C_in * L, C_out * L_out), lambda i: (0, 0)),
            pl.BlockSpec((1, C_out * L_out), lambda i: (0, 0)),
            pl.BlockSpec((C_out * L_out, H), lambda i: (0, 0)),
            pl.BlockSpec((1, H), lambda i: (0, 0)),
            pl.BlockSpec((H, O_pad), lambda i: (0, 0)),
            pl.BlockSpec((1, O_pad), lambda i: (0, 0)),
        ],
        out_specs=pl.BlockSpec((tile_n, O_pad), lambda i: (i, 0)),
        compiler_params=pltpu.CompilerParams(
            dimension_semantics=("parallel",)),
    )(x_flat, w_band, cb_flat, w1t, b1r, w2t, b2r)

    return out[:N, :O]


def _reference_forward(x, conv_w, conv_b, w1, b1, w2, b2):
    y = lax.conv_general_dilated(x, conv_w, (1,), 'VALID',
                                 dimension_numbers=('NCH', 'OIH', 'NCH'))
    y = jnp.maximum(y + conv_b[None, :, None], 0.0)
    f = y.reshape(y.shape[0], -1)
    h = jnp.maximum(f @ w1.T + b1, 0.0)
    return h @ w2.T + b2


if __name__ == "__main__":
    # Small shapes consistent with the module:
    #   params = [(C_in=4, C_out=8, K=3), (C_out*L_out=112, H=32), (H=32, O=10)]
    N, C_in, L = 2, 4, 16
    C_out, K = 8, 3
    L_out = L - K + 1
    H, O = 32, 10

    key = jax.random.PRNGKey(0)
    ks = jax.random.split(key, 7)
    x = jax.random.normal(ks[0], (N, C_in, L), jnp.float32)
    conv_w = jax.random.normal(ks[1], (C_out, C_in, K), jnp.float32) * 0.2
    conv_b = jax.random.normal(ks[2], (C_out,), jnp.float32) * 0.1
    w1 = jax.random.normal(ks[3], (H, C_out * L_out), jnp.float32) * 0.05
    b1 = jax.random.normal(ks[4], (H,), jnp.float32) * 0.1
    w2 = jax.random.normal(ks[5], (O, H), jnp.float32) * 0.1
    b2 = jax.random.normal(ks[6], (O,), jnp.float32) * 0.1

    ref = _reference_forward(x, conv_w, conv_b, w1, b1, w2, b2)

    # f32 path (exact semantics of the PyTorch module).
    out = single_cnn_layer_forward(x, conv_w, conv_b, w1, b1, w2, b2)
    out = jax.block_until_ready(out)
    assert out.shape == (N, O)
    assert jnp.allclose(out, ref, rtol=1e-5, atol=1e-5), "f32 mismatch vs reference"

    # bf16 compute path (bandwidth optimization for v6e/v7x): loose tolerance.
    out_bf16 = single_cnn_layer_forward(x, conv_w, conv_b, w1, b1, w2, b2,
                                        compute_dtype=jnp.bfloat16)
    out_bf16 = jax.block_until_ready(out_bf16)
    assert out_bf16.shape == (N, O)
    assert jnp.allclose(out_bf16, ref, rtol=1e-1, atol=1e-1), "bf16 mismatch vs reference"

    print("KERNEL_OK")
</pallas_src>

<mosaic_0001>
module attributes {stable_mosaic.version = 11 : i64} {
  func.func @_single_cnn_kernel(%arg0: i32, %arg1: memref<8x64xf32, #tpu.memory_space<vmem>>, %arg2: memref<64x112xf32, #tpu.memory_space<vmem>>, %arg3: memref<1x112xf32, #tpu.memory_space<vmem>>, %arg4: memref<112x32xf32, #tpu.memory_space<vmem>>, %arg5: memref<1x32xf32, #tpu.memory_space<vmem>>, %arg6: memref<32x16xf32, #tpu.memory_space<vmem>>, %arg7: memref<1x16xf32, #tpu.memory_space<vmem>>, %arg8: memref<8x16xf32, #tpu.memory_space<vmem>>) attributes {dimension_semantics = [#tpu.dimension_semantics<parallel>], iteration_bounds = array<i64: 1>, scalar_prefetch = 0 : i64, scratch_operands = 0 : i64, tpu.core_type = #tpu.core_type<tc>, window_params = [{transform_indices = @transform_0, window_bounds = array<i64: 8, 64>}, {pipeline_mode = #tpu.pipeline_mode<synchronous>, transform_indices = @transform_1, window_bounds = array<i64: 64, 112>}, {pipeline_mode = #tpu.pipeline_mode<synchronous>, transform_indices = @transform_2, window_bounds = array<i64: 1, 112>}, {pipeline_mode = #tpu.pipeline_mode<synchronous>, transform_indices = @transform_3, window_bounds = array<i64: 112, 32>}, {pipeline_mode = #tpu.pipeline_mode<synchronous>, transform_indices = @transform_4, window_bounds = array<i64: 1, 32>}, {pipeline_mode = #tpu.pipeline_mode<synchronous>, transform_indices = @transform_5, window_bounds = array<i64: 32, 16>}, {pipeline_mode = #tpu.pipeline_mode<synchronous>, transform_indices = @transform_6, window_bounds = array<i64: 1, 16>}, {transform_indices = @transform_7, window_bounds = array<i64: 8, 16>}]} {
    %c0 = arith.constant 0 : index
    %c0_0 = arith.constant 0 : index
    %0 = vector.load %arg1[%c0, %c0_0] : memref<8x64xf32, #tpu.memory_space<vmem>>, vector<8x64xf32>
    %c0_1 = arith.constant 0 : index
    %c0_2 = arith.constant 0 : index
    %1 = vector.load %arg2[%c0_1, %c0_2] : memref<64x112xf32, #tpu.memory_space<vmem>>, vector<64x112xf32>
    %cst = arith.constant dense<0.000000e+00> : vector<8x112xf32>
    %2 = tpu.matmul %0, %1, %cst {dimension_numbers = #tpu.dot_dimension_numbers<[1], [0], [0], [1], [0, 0, 1, 1], [], []>} : vector<8x64xf32>, vector<64x112xf32>, vector<8x112xf32> -> vector<8x112xf32>
    %c0_3 = arith.constant 0 : index
    %c0_4 = arith.constant 0 : index
    %3 = vector.load %arg3[%c0_3, %c0_4] : memref<1x112xf32, #tpu.memory_space<vmem>>, vector<1x112xf32>
    %4 = vector.broadcast %3 : vector<1x112xf32> to vector<8x112xf32>
    %5 = arith.addf %2, %4 : vector<8x112xf32>
    %cst_5 = arith.constant 0.000000e+00 : f32
    %6 = vector.broadcast %cst_5 : f32 to vector<8x112xf32>
    %7 = arith.maximumf %5, %6 : vector<8x112xf32>
    %c0_6 = arith.constant 0 : index
    %c0_7 = arith.constant 0 : index
    %8 = vector.load %arg4[%c0_6, %c0_7] : memref<112x32xf32, #tpu.memory_space<vmem>>, vector<112x32xf32>
    %cst_8 = arith.constant dense<0.000000e+00> : vector<8x32xf32>
    %9 = tpu.matmul %7, %8, %cst_8 {dimension_numbers = #tpu.dot_dimension_numbers<[1], [0], [0], [1], [0, 0, 1, 1], [], []>} : vector<8x112xf32>, vector<112x32xf32>, vector<8x32xf32> -> vector<8x32xf32>
    %c0_9 = arith.constant 0 : index
    %c0_10 = arith.constant 0 : index
    %10 = vector.load %arg5[%c0_9, %c0_10] : memref<1x32xf32, #tpu.memory_space<vmem>>, vector<1x32xf32>
    %11 = vector.broadcast %10 : vector<1x32xf32> to vector<8x32xf32>
    %12 = arith.addf %9, %11 : vector<8x32xf32>
    %cst_11 = arith.constant 0.000000e+00 : f32
    %13 = vector.broadcast %cst_11 : f32 to vector<8x32xf32>
    %14 = arith.maximumf %12, %13 : vector<8x32xf32>
    %c0_12 = arith.constant 0 : index
    %c0_13 = arith.constant 0 : index
    %15 = vector.load %arg6[%c0_12, %c0_13] : memref<32x16xf32, #tpu.memory_space<vmem>>, vector<32x16xf32>
    %cst_14 = arith.constant dense<0.000000e+00> : vector<8x16xf32>
    %16 = tpu.matmul %14, %15, %cst_14 {dimension_numbers = #tpu.dot_dimension_numbers<[1], [0], [0], [1], [0, 0, 1, 1], [], []>} : vector<8x32xf32>, vector<32x16xf32>, vector<8x16xf32> -> vector<8x16xf32>
    %c0_15 = arith.constant 0 : index
    %c0_16 = arith.constant 0 : index
    %17 = vector.load %arg7[%c0_15, %c0_16] : memref<1x16xf32, #tpu.memory_space<vmem>>, vector<1x16xf32>
    %18 = vector.broadcast %17 : vector<1x16xf32> to vector<8x16xf32>
    %19 = arith.addf %16, %18 : vector<8x16xf32>
    %c0_17 = arith.constant 0 : index
    %c0_18 = arith.constant 0 : index
    %20 = vector.load %arg8[%c0_17, %c0_18] : memref<8x16xf32, #tpu.memory_space<vmem>>, vector<8x16xf32>
    tpu.vector_store %arg8[%c0_17, %c0_18], %19 {strides = array<i32>} : memref<8x16xf32, #tpu.memory_space<vmem>>, vector<8x16xf32>,
    return
  }
  func.func @transform_0(%arg0: i32) -> (i32, i32) {
    %c0_i32 = arith.constant 0 : i32
    %c0_i32_0 = arith.constant 0 : i32
    return %arg0, %c0_i32 : i32, i32
  }
  func.func @transform_1(%arg0: i32) -> (i32, i32) {
    %c0_i32 = arith.constant 0 : i32
    %c0_i32_0 = arith.constant 0 : i32
    %c0_i32_1 = arith.constant 0 : i32
    return %c0_i32, %c0_i32_0 : i32, i32
  }
  func.func @transform_2(%arg0: i32) -> (i32, i32) {
    %c0_i32 = arith.constant 0 : i32
    %c0_i32_0 = arith.constant 0 : i32
    %c0_i32_1 = arith.constant 0 : i32
    return %c0_i32, %c0_i32_0 : i32, i32
  }
  func.func @transform_3(%arg0: i32) -> (i32, i32) {
    %c0_i32 = arith.constant 0 : i32
    %c0_i32_0 = arith.constant 0 : i32
    %c0_i32_1 = arith.constant 0 : i32
    return %c0_i32, %c0_i32_0 : i32, i32
  }
  func.func @transform_4(%arg0: i32) -> (i32, i32) {
    %c0_i32 = arith.constant 0 : i32
    %c0_i32_0 = arith.constant 0 : i32
    %c0_i32_1 = arith.constant 0 : i32
    return %c0_i32, %c0_i32_0 : i32, i32
  }
  func.func @transform_5(%arg0: i32) -> (i32, i32) {
    %c0_i32 = arith.constant 0 : i32
    %c0_i32_0 = arith.constant 0 : i32
    %c0_i32_1 = arith.constant 0 : i32
    return %c0_i32, %c0_i32_0 : i32, i32
  }
  func.func @transform_6(%arg0: i32) -> (i32, i32) {
    %c0_i32 = arith.constant 0 : i32
    %c0_i32_0 = arith.constant 0 : i32
    %c0_i32_1 = arith.constant 0 : i32
    return %c0_i32, %c0_i32_0 : i32, i32
  }
  func.func @transform_7(%arg0: i32) -> (i32, i32) {
    %c0_i32 = arith.constant 0 : i32
    %c0_i32_0 = arith.constant 0 : i32
    return %arg0, %c0_i32 : i32, i32
  }
}

</mosaic_0001>

<bundles_post_ra>
// kernel: tpu_custom_call.1
= control target key start
LH: loop header
LB: loop body
LE: loop exit
PB: predicated region body
PF: predicated region fallthrough
CT: control target
= control target key end

     0   :  { %v478_v3 = vmov 0.0|0.0   ;;  %vm479_vm0 = vmmov 0   ;;  %v480_v6 = vmov 0.0   ;;  %s640_s0 = inlined_call_operand.vmem [shape: f32[8,64], index: 0, kind: input, shape index: {}]   ;;  %s641_s1 = inlined_call_operand.vmem [shape: f32[64,112], index: 1, kind: input, shape index: {}]   ;;  %s642_s2 = inlined_call_operand.vmem [shape: f32[1,112], index: 2, kind: input, shape index: {}]   ;;  %s643_s3 = inlined_call_operand.vmem [shape: f32[112,32], index: 3, kind: input, shape index: {}]   ;;  %s644_s4 = inlined_call_operand.vmem [shape: f32[1,32], index: 4, kind: input, shape index: {}]   ;;  %s645_s5 = inlined_call_operand.vmem [shape: f32[32,16], index: 5, kind: input, shape index: {}]   ;;  %s646_s6 = inlined_call_operand.vmem [shape: f32[1,16], index: 6, kind: input, shape index: {}]   ;;  %s647_s7 = inlined_call_operand.hbm [shape: f32[8,16], index: 7, kind: output, shape index: {}]  }
   0x1   :  { %v28_v0 = vld [vmem:[%s641_s1] sm:$0xff]  ;;  %v29_v1 = vld [vmem:[%s641_s1 + $0x8] sm:$0xff]  ;;  %v30_v2 = vld [vmem:[%s641_s1 + $0x10] sm:$0xff]  ;;  %411 = vmatprep.subr.bf16.mxu0 %v478_v3  ;;  %366 = vmatprep.mubr.msk.f32.mxu0 %vm479_vm0, %v480_v6 }
   0x2   :  { %v412_v4 = vpack.c.bf16 %v29_v1, %v28_v0  ;;  %v31_v5 = vld [vmem:[%s641_s1 + $0x18] sm:$0xff]  ;;  %423 = vmatprep.subr.bf16.mxu1 %v478_v3  ;;  %397 = vmatprep.mubr.msk.f32.mxu1 %vm479_vm0, %v480_v6  ;;  %v118_v8 = vld [vmem:[%s643_s3] sm:$0xff]  ;;  %v119_v9 = vld [vmem:[%s643_s3 + $0x8] sm:$0xff] }
   0x3   :  { %v415_v7 = vpack.c.bf16 %v31_v5, %v30_v2  ;;  %v120_v10 = vld [vmem:[%s643_s3 + $0x10] sm:$0xff]  ;;  %v32_v11 = vld [vmem:[%s641_s1 + $0x20] sm:$0xff]  ;;  %v33_v12 = vld [vmem:[%s641_s1 + $0x28] sm:$0xff]  ;;  %v424_v13 = vpack.c.bf16 %v119_v9, %v118_v8 }
   0x4   :  { %413 = vmatpush3.bf16.msra.mxu0 %v412_v4  ;;  %v121_v14 = vld [vmem:[%s643_s3 + $0x18] sm:$0xff]  ;;  %v418_v16 = vpack.c.bf16 %v33_v12, %v32_v11  ;;  %v122_v17 = vld [vmem:[%s643_s3 + $0x20] sm:$0xff]  ;;  %v123_v18 = vld [vmem:[%s643_s3 + $0x28] sm:$0xff] }
   0x5   :  { %414 = vmatprep.subr.bf16.mxu0 %v478_v3  ;;  %425 = vmatpush3.bf16.msra.mxu1 %v424_v13  ;;  %v427_v15 = vpack.c.bf16 %v121_v14, %v120_v10 }
   0x6   :  { %426 = vmatprep.subr.bf16.mxu1 %v478_v3 }
   0x8   :  { %416 = vmatpush3.bf16.msra.mxu0 %v415_v7 }
   0x9   :  { %12 = vsyncpa [#allocation3], 0  ;;  %417 = vmatprep.subr.bf16.mxu0 %v478_v3  ;;  %v34_v19 = vld [vmem:[%s641_s1 + $0x30] sm:$0xff]  ;;  %v35_v20 = vld [vmem:[%s641_s1 + $0x38] sm:$0xff]  ;;  %428 = vmatpush3.bf16.msra.mxu1 %v427_v15  ;;  %v430_v21 = vpack.c.bf16 %v123_v18, %v122_v17  ;;  %vm43_vm1 = vcmask 523264   ;;  %vm139_vm2 = vcmask 916480  }
   0xa   :  { %v421_v22 = vpack.c.bf16 %v35_v20, %v34_v19  ;;  %429 = vmatprep.subr.bf16.mxu1 %v478_v3  ;;  %v124_v23 = vld [vmem:[%s643_s3 + $0x30] sm:$0xff]  ;;  %v125_v24 = vld [vmem:[%s643_s3 + $0x38] sm:$0xff]  ;;  %v27_v26 = vld [vmem:[%s640_s0] sm:$0xff]  ;;  %vm225_vm3 = vcmask 261120   ;;  %s481_s10 = smov [#allocation2]   ;;  %vm299_vm4 = vcmask 130048  }
   0xb   :  { %v433_v25 = vpack.c.bf16 %v125_v24, %v124_v23  ;;  %v126_v27 = vld [vmem:[%s643_s3 + $0x40] sm:$0xff]  ;;  %v127_v28 = vld [vmem:[%s643_s3 + $0x48] sm:$0xff]  ;;  %v128_v30 = vld [vmem:[%s643_s3 + $0x50] sm:$0xff]  ;;  %s307_s11 = sshll.u32 %s481_s10, 4  ;;  %s308_s11 = int_to_ptr.vmem [resolvable:$true] %s307_s11 }
   0xc   :  { %419 = vmatpush3.bf16.msra.mxu0 %v418_v16  ;;  %v436_v29 = vpack.c.bf16 %v127_v28, %v126_v27  ;;  %v129_v31 = vld [vmem:[%s643_s3 + $0x58] sm:$0xff]  ;;  %v130_v33 = vld [vmem:[%s643_s3 + $0x60] sm:$0xff]  ;;  %v131_v34 = vld [vmem:[%s643_s3 + $0x68] sm:$0xff]  ;;  %p459_p1 = scmp.lt.s32.totalorder %s308_s11, %s308_s11 }
   0xd   :  { %420 = vmatprep.subr.bf16.mxu0 %v478_v3  ;;  %431 = vmatpush3.bf16.msra.mxu1 %v430_v21  ;;  %v439_v32 = vpack.c.bf16 %v129_v31, %v128_v30  ;;  %v442_v35 = vpack.c.bf16 %v131_v34, %v130_v33  ;;  %v214_v36 = vld [vmem:[%s645_s5] sm:$0xff]  ;;  %v215_v37 = vld [vmem:[%s645_s5 + $0x8] sm:$0xff]  ;;  %v216_v44 = vld [vmem:[%s645_s5 + $0x10] sm:$0xff] }
   0xe   :  { %432 = vmatprep.subr.bf16.mxu1 %v478_v3  ;;  %v445_v38 = vpack.c.bf16 %v215_v37, %v214_v36  ;;  %v315_v39 = vld [vmem:[%s642_s2] ss:$0 sm:$0xff]  ;;  %v217_v45 = vld [vmem:[%s645_s5 + $0x18] sm:$0xff]  ;;  %s454_s5 = scalar_lea.vmem %s308_s11, 128 }
   0xf   :  { %v448_v46 = vpack.c.bf16 %v217_v45, %v216_v44  ;;  %v317_v47 = vld [vmem:[%s644_s4] ss:$0 sm:$0xff]  ;;  %p455_p0 = scmp.ne.s32.totalorder %s308_s11, %s454_s5  ;;  %p460_p2 = scmp.lt.s32.totalorder %s454_s5, %s454_s5 }
  0x10   :  { %422 = vmatpush3.bf16.msra.mxu0 %v421_v22  ;;  %v319_v52 = vld [vmem:[%s646_s6] ss:$0 sm:$0xff] }
  0x11   :  { %444 = vmatprep.subr.bf16.mxu0 %v478_v3  ;;  %434 = vmatpush3.bf16.msra.mxu1 %v433_v25  ;;  %p461_p3 = por %p460_p2, %p459_p1 }
  0x12   :  { %435 = vmatprep.subr.bf16.mxu1 %v478_v3 }
  0x13   :  { %367 = vmatmul.mubr.msk.f32.vlgmr.msra.gmra.mrb[0].mxu0 %vm43_vm1, %v27_v26  ;;  %p462_p4 = pnand %p461_p3, %p455_p0 }
  0x14   :  { %408 = vmatprep.mubr.msk.f32.mxu0 %vm479_vm0, %v480_v6  ;;  %446 = vmatpush3.bf16.msra.mxu0 %v445_v38 }
  0x15   :  { %437 = vmatpush3.bf16.msra.mxu1 %v436_v29  ;;  %447 = vmatprep.subr.bf16.mxu0 %v478_v3 }
  0x16   :  { %438 = vmatprep.subr.bf16.mxu1 %v478_v3 }
  0x18   :  { %449 = vmatpush3.bf16.msra.mxu0 %v448_v46 }
  0x19   :  { %440 = vmatpush3.bf16.msra.mxu1 %v439_v32 }
  0x1a   :  { %441 = vmatprep.subr.bf16.mxu1 %v478_v3 }
  0x1d   :  { %443 = vmatpush3.bf16.msra.mxu1 %v442_v35 }
  0xe6   :  { %v113_v40 = vpop.f32.mrb[0].mxu0 }
  0xe7   :  { %v114_v41 = vadd.f32 %v315_v39, %v113_v40  ;;  %v368_v42 = vpop.f32.mrb[1].mxu0 }
  0xe9   :  { %v117_v43 = vmax.f32 %v114_v41, 0.0 }
  0xeb   :  { %398 = vmatmul.mubr.msk.f32.vlgmr.msra.gmra.mrb[0].mxu1 %vm139_vm2, %v117_v43 }
 0x1be   :  { %v209_v48 = vpop.f32.mrb[0].mxu1 }
 0x1bf   :  { %v210_v49 = vadd.f32 %v317_v47, %v209_v48  ;;  %v399_v50 = vpop.f32.mrb[1].mxu1 }
 0x1c1   :  { %v213_v51 = vmax.f32 %v210_v49, 0.0 }
 0x1c3   :  { %409 = vmatmul.mubr.msk.f32.vlgmr.msra.gmra.mrb[2].mxu0 %vm225_vm3, %v213_v51 }
 0x296   :  { %v295_v53 = vpop.f32.mrb[2].mxu0 }
 0x297   :  { %v296_v54 = vadd.f32 %v319_v52, %v295_v53  ;;  %v410_v55 = vpop.f32.mrb[3].mxu0 }
 0x299   :  { %300 = vst.msk [vmem:[#allocation2] sm:$0xff] %vm299_vm4, %v296_v54 }
 0x29a   :  { %465 = shalt.err (!%p462_p4)
}
 0x29b   :  { %s466_s13 = scalar_lea.hbm %s647_s7, 128 }
 0x29c   :  { %p467_p5 = scmp.ne.s32.totalorder %s647_s7, %s466_s13  ;;  %p470_p6 = scmp.lt.u32.totalorder %s466_s13, %s647_s7 }
 0x29e   :  { %p472_p7 = pnand %p470_p6, %p467_p5 }
 0x2a0   :  { %475 = shalt.err (!%p472_p7)
}
 0x2a1   :  { %310 = dma.vmem_to_hbm [thread:$0]  %s308_s11, 128, %s647_s7, [#allocation3]  }
 0x2a2   :  { %476 = dma.done.wait [#allocation3], 128  }
 0x2a3   :  { %477 = vsyncadd [#allocation3], 4294967168 }
 0x2a4   :  { %314 = vsyncpa [#allocation3], 1 }

</bundles_post_ra>
